<compile_context>
chip_gen: v7x
topology: tpu7x:2x2x1
jax: 0.10.0
libtpu: 0.0.40
codegen_flags: <defaults>
</compile_context>

<pallas_src>
import functools

import jax
import jax.numpy as jnp
from jax.experimental import pallas as pl
from jax.experimental.pallas import tpu as pltpu


def _round_up(n: int, m: int) -> int:
    return ((n + m - 1) // m) * m


def _choose_tm(batch: int, block_m: int):
    """Pick a batch-tile size that avoids padding whenever possible.

    Returns (tm, needs_pad).
    """
    if batch <= block_m:
        # Whole batch in one (or two) tiles; block == full array dim, so no (8,128)
        # constraint and no padding.  Split in two for v7x's 2 TCs when big enough.
        if batch >= 1024 and batch % 16 == 0:
            return batch // 2, False
        return batch, False
    # Large batch: largest multiple-of-8 divisor of B that fits block_m -> exact tiling.
    if batch % 8 == 0:
        tm = ((block_m // 8) * 8)
        while tm >= 256:                       # don't accept pathologically small tiles
            if batch % tm == 0:
                return tm, False
            tm -= 8
    # Fallback: pad the batch up to a multiple of block_m (rare; costs one x copy).
    return block_m, True


def _mlp_kernel(x_ref, w1_ref, b1_ref, w2_ref, b2_ref, o_ref):
    # One batch tile per grid step: two MXU matmuls + f32 bias-add (VPU) / tanh (EUP).
    x = x_ref[...]
    h = jnp.dot(x.astype(w1_ref.dtype), w1_ref[...],
                preferred_element_type=jnp.float32)
    h = jnp.tanh(h + b1_ref[...])              # f32 tanh (v5e EUP has no bf16 path)
    y = jnp.dot(h.astype(w2_ref.dtype), w2_ref[...],
                preferred_element_type=jnp.float32)
    o_ref[...] = (y + b2_ref[...]).astype(o_ref.dtype)


@functools.partial(jax.jit, static_argnames=("block_m", "matmul_dtype"))
def nng_hmc_forward(x, w1, b1, w2, b2, *, block_m: int = 1024,
                    matmul_dtype=jnp.float32):
    """Pallas forward of NNgHMC: Linear -> Tanh -> Linear.

    x  : (B, input_dim)   f32 (or bf16 if matmul_dtype=bf16 and the caller streams bf16)
    w1 : (input_dim, hidden_dim),  b1 : (1, hidden_dim)
    w2 : (hidden_dim, output_dim), b2 : (1, output_dim)
    """
    B, input_dim = x.shape
    hidden_dim, output_dim = w2.shape

    tm, needs_pad = _choose_tm(B, block_m)
    if needs_pad:
        # TODO(synk): rare fallback; a ragged-tail second pallas_call would avoid this
        # full-array copy of x.
        b_pad = _round_up(B, tm)
        x = jnp.pad(x, ((0, b_pad - B), (0, 0)))
    else:
        b_pad = B
    grid = (b_pad // tm,)

    # MXU operands in matmul_dtype; biases and accumulation stay f32.
    w1_mx = w1.astype(matmul_dtype)
    w2_mx = w2.astype(matmul_dtype)
    b1_f32 = b1.astype(jnp.float32)
    b2_f32 = b2.astype(jnp.float32)

    out = pl.pallas_call(
        _mlp_kernel,
        out_shape=jax.ShapeDtypeStruct((b_pad, output_dim), x.dtype),
        grid=grid,
        in_specs=[
            pl.BlockSpec((tm, input_dim), lambda i: (i, 0)),           # streamed
            pl.BlockSpec((input_dim, hidden_dim), lambda i: (0, 0)),   # VMEM-resident
            pl.BlockSpec((1, hidden_dim), lambda i: (0, 0)),           # VMEM-resident
            pl.BlockSpec((hidden_dim, output_dim), lambda i: (0, 0)),  # VMEM-resident
            pl.BlockSpec((1, output_dim), lambda i: (0, 0)),           # VMEM-resident
        ],
        out_specs=pl.BlockSpec((tm, output_dim), lambda i: (i, 0)),
        compiler_params=pltpu.CompilerParams(
            dimension_semantics=("parallel",),   # shard batch across v7x's 2 TCs
        ),
    )(x, w1_mx, b1_f32, w2_mx, b2_f32)

    return out[:B] if needs_pad else out


def nng_hmc_reference(x, w1, b1, w2, b2):
    h = jnp.tanh(x @ w1 + b1)
    return h @ w2 + b2


if __name__ == "__main__":
    # Shapes consistent with the module's forward.
    input_dim, hidden_dim, output_dim = 32, 64, 16

    key = jax.random.PRNGKey(0)
    kx, kw1, kb1, kw2, kb2, kx2 = jax.random.split(key, 6)

    # Deterministic "Linear" parameter init (Kaiming-uniform-ish bounds like torch).
    bound1 = 1.0 / jnp.sqrt(input_dim)
    w1 = jax.random.uniform(kw1, (input_dim, hidden_dim), jnp.float32, -bound1, bound1)
    b1 = jax.random.uniform(kb1, (1, hidden_dim), jnp.float32, -bound1, bound1)

    bound2 = 1.0 / jnp.sqrt(hidden_dim)
    w2 = jax.random.uniform(kw2, (hidden_dim, output_dim), jnp.float32, -bound2, bound2)
    b2 = jax.random.uniform(kb2, (1, output_dim), jnp.float32, -bound2, bound2)

    # --- Small batch: single whole-batch tile, no padding ---------------------------
    batch = 256
    x = jax.random.normal(kx, (batch, input_dim), dtype=jnp.float32)
    ref = nng_hmc_reference(x, w1, b1, w2, b2)

    # Default f32-operand path (note: MXU f32 matmuls are multi-pass, so allclose —
    # not bit-identity — is the right check).
    out_f32 = jax.block_until_ready(nng_hmc_forward(x, w1, b1, w2, b2))
    assert out_f32.shape == (batch, output_dim)
    assert jnp.allclose(out_f32, ref, atol=1e-5, rtol=1e-5)

    # bf16 MXU operand path (f32 accumulation), looser tolerance.
    out_bf16 = jax.block_until_ready(
        nng_hmc_forward(x, w1, b1, w2, b2, matmul_dtype=jnp.bfloat16))
    assert out_bf16.shape == (batch, output_dim)
    assert jnp.allclose(out_bf16, ref, atol=2e-2, rtol=2e-2)

    # --- Larger batch: exercises the multi-step (pad-free, divisor-tiled) grid ------
    batch2 = 1536                              # > block_m=1024 -> tm=768, grid=(2,)
    x2 = jax.random.normal(kx2, (batch2, input_dim), dtype=jnp.float32)
    ref2 = nng_hmc_reference(x2, w1, b1, w2, b2)
    out2 = jax.block_until_ready(nng_hmc_forward(x2, w1, b1, w2, b2))
    assert out2.shape == (batch2, output_dim)
    assert jnp.allclose(out2, ref2, atol=1e-5, rtol=1e-5)

    print("KERNEL_OK")
</pallas_src>

<mosaic_0001>
module attributes {stable_mosaic.version = 11 : i64} {
  func.func @_mlp_kernel(%arg0: i32, %arg1: memref<256x32xf32, #tpu.memory_space<vmem>>, %arg2: memref<32x64xf32, #tpu.memory_space<vmem>>, %arg3: memref<1x64xf32, #tpu.memory_space<vmem>>, %arg4: memref<64x16xf32, #tpu.memory_space<vmem>>, %arg5: memref<1x16xf32, #tpu.memory_space<vmem>>, %arg6: memref<256x16xf32, #tpu.memory_space<vmem>>) attributes {dimension_semantics = [#tpu.dimension_semantics<parallel>], iteration_bounds = array<i64: 1>, scalar_prefetch = 0 : i64, scratch_operands = 0 : i64, tpu.core_type = #tpu.core_type<tc>, window_params = [{transform_indices = @transform_0, window_bounds = array<i64: 256, 32>}, {pipeline_mode = #tpu.pipeline_mode<synchronous>, transform_indices = @transform_1, window_bounds = array<i64: 32, 64>}, {pipeline_mode = #tpu.pipeline_mode<synchronous>, transform_indices = @transform_2, window_bounds = array<i64: 1, 64>}, {pipeline_mode = #tpu.pipeline_mode<synchronous>, transform_indices = @transform_3, window_bounds = array<i64: 64, 16>}, {pipeline_mode = #tpu.pipeline_mode<synchronous>, transform_indices = @transform_4, window_bounds = array<i64: 1, 16>}, {transform_indices = @transform_5, window_bounds = array<i64: 256, 16>}]} {
    %c0 = arith.constant 0 : index
    %c0_0 = arith.constant 0 : index
    %0 = vector.load %arg1[%c0, %c0_0] : memref<256x32xf32, #tpu.memory_space<vmem>>, vector<256x32xf32>
    %c0_1 = arith.constant 0 : index
    %c0_2 = arith.constant 0 : index
    %1 = vector.load %arg2[%c0_1, %c0_2] : memref<32x64xf32, #tpu.memory_space<vmem>>, vector<32x64xf32>
    %cst = arith.constant dense<0.000000e+00> : vector<256x64xf32>
    %2 = tpu.matmul %0, %1, %cst {dimension_numbers = #tpu.dot_dimension_numbers<[1], [0], [0], [1], [0, 0, 1, 1], [], []>} : vector<256x32xf32>, vector<32x64xf32>, vector<256x64xf32> -> vector<256x64xf32>
    %c0_3 = arith.constant 0 : index
    %c0_4 = arith.constant 0 : index
    %3 = vector.load %arg3[%c0_3, %c0_4] : memref<1x64xf32, #tpu.memory_space<vmem>>, vector<1x64xf32>
    %4 = vector.broadcast %3 : vector<1x64xf32> to vector<256x64xf32>
    %5 = arith.addf %2, %4 : vector<256x64xf32>
    %6 = math.tanh %5 : vector<256x64xf32>
    %c0_5 = arith.constant 0 : index
    %c0_6 = arith.constant 0 : index
    %7 = vector.load %arg4[%c0_5, %c0_6] : memref<64x16xf32, #tpu.memory_space<vmem>>, vector<64x16xf32>
    %cst_7 = arith.constant dense<0.000000e+00> : vector<256x16xf32>
    %8 = tpu.matmul %6, %7, %cst_7 {dimension_numbers = #tpu.dot_dimension_numbers<[1], [0], [0], [1], [0, 0, 1, 1], [], []>} : vector<256x64xf32>, vector<64x16xf32>, vector<256x16xf32> -> vector<256x16xf32>
    %c0_8 = arith.constant 0 : index
    %c0_9 = arith.constant 0 : index
    %9 = vector.load %arg5[%c0_8, %c0_9] : memref<1x16xf32, #tpu.memory_space<vmem>>, vector<1x16xf32>
    %10 = vector.broadcast %9 : vector<1x16xf32> to vector<256x16xf32>
    %11 = arith.addf %8, %10 : vector<256x16xf32>
    %c0_10 = arith.constant 0 : index
    %c0_11 = arith.constant 0 : index
    %12 = vector.load %arg6[%c0_10, %c0_11] : memref<256x16xf32, #tpu.memory_space<vmem>>, vector<256x16xf32>
    tpu.vector_store %arg6[%c0_10, %c0_11], %11 {strides = array<i32>} : memref<256x16xf32, #tpu.memory_space<vmem>>, vector<256x16xf32>,
    return
  }
  func.func @transform_0(%arg0: i32) -> (i32, i32) {
    %c0_i32 = arith.constant 0 : i32
    %c0_i32_0 = arith.constant 0 : i32
    return %arg0, %c0_i32 : i32, i32
  }
  func.func @transform_1(%arg0: i32) -> (i32, i32) {
    %c0_i32 = arith.constant 0 : i32
    %c0_i32_0 = arith.constant 0 : i32
    %c0_i32_1 = arith.constant 0 : i32
    return %c0_i32, %c0_i32_0 : i32, i32
  }
  func.func @transform_2(%arg0: i32) -> (i32, i32) {
    %c0_i32 = arith.constant 0 : i32
    %c0_i32_0 = arith.constant 0 : i32
    %c0_i32_1 = arith.constant 0 : i32
    return %c0_i32, %c0_i32_0 : i32, i32
  }
  func.func @transform_3(%arg0: i32) -> (i32, i32) {
    %c0_i32 = arith.constant 0 : i32
    %c0_i32_0 = arith.constant 0 : i32
    %c0_i32_1 = arith.constant 0 : i32
    return %c0_i32, %c0_i32_0 : i32, i32
  }
  func.func @transform_4(%arg0: i32) -> (i32, i32) {
    %c0_i32 = arith.constant 0 : i32
    %c0_i32_0 = arith.constant 0 : i32
    %c0_i32_1 = arith.constant 0 : i32
    return %c0_i32, %c0_i32_0 : i32, i32
  }
  func.func @transform_5(%arg0: i32) -> (i32, i32) {
    %c0_i32 = arith.constant 0 : i32
    %c0_i32_0 = arith.constant 0 : i32
    return %arg0, %c0_i32 : i32, i32
  }
}

</mosaic_0001>

<bundles_post_ra>
// kernel: nng_hmc_forward.1
= control target key start
LH: loop header
LB: loop body
LE: loop exit
PB: predicated region body
PF: predicated region fallthrough
CT: control target
= control target key end

     0   :  { %vm63_vm0 = vcmask 261120   ;;  %vm432_vm1 = vcmask 523264   ;;  %vm754_vm2 = vcmask 130048   ;;  %s1577_s1 = inlined_call_operand.vmem [shape: f32[32,64], index: 1, kind: input, shape index: {}]   ;;  %s1578_s0 = inlined_call_operand.vmem [shape: f32[256,32], index: 0, kind: input, shape index: {}]   ;;  %s1579_s3 = inlined_call_operand.vmem [shape: f32[64,16], index: 3, kind: input, shape index: {}]   ;;  %s1580_s2 = inlined_call_operand.vmem [shape: f32[1,64], index: 2, kind: input, shape index: {}]   ;;  %s1581_s4 = inlined_call_operand.vmem [shape: f32[1,16], index: 4, kind: input, shape index: {}]   ;;  %s1582_s5 = inlined_call_operand.vmem [shape: f32[256,16], index: 5, kind: output, shape index: {}]  }
   0x1   :  { %v52_v0 = vld [vmem:[%s1577_s1] sm:$0xff]  ;;  %v53_v1 = vld [vmem:[%s1577_s1 + $0x8] sm:$0xff]  ;;  %v54_v2 = vld [vmem:[%s1577_s1 + $0x10] sm:$0xff] }
   0x2   :  { %v1053_v3 = vpack.c.bf16 %v53_v1, %v52_v0  ;;  %v55_v4 = vld [vmem:[%s1577_s1 + $0x18] sm:$0xff]  ;;  %v20_v5 = vld [vmem:[%s1578_s0] sm:$0xff]  ;;  %v21_v7 = vld [vmem:[%s1578_s0 + $0x8] sm:$0xff] }
   0x3   :  { %v1057_v6 = vpack.c.bf16 %v55_v4, %v54_v2  ;;  %941 = vmatprep.mubr.msk.f32.mxu0 %vm63_vm0, %v20_v5  ;;  %v22_v8 = vld [vmem:[%s1578_s0 + $0x10] sm:$0xff]  ;;  %v23_v9 = vld [vmem:[%s1578_s0 + $0x18] sm:$0xff]  ;;  %v24_v10 = vld [vmem:[%s1578_s0 + $0x20] sm:$0xff] }
   0x4   :  { %1054 = vmatprep.subr.bf16.mxu0 %v1053_v3  ;;  %v25_v11 = vld [vmem:[%s1578_s0 + $0x28] sm:$0xff]  ;;  %v26_v12 = vld [vmem:[%s1578_s0 + $0x30] sm:$0xff]  ;;  %v27_v13 = vld [vmem:[%s1578_s0 + $0x38] sm:$0xff] }
   0x5   :  { %1056 = vmatpush3.bf16.msra.mxu0 %v1053_v3  ;;  %v28_v14 = vld [vmem:[%s1578_s0 + $0x40] sm:$0xff]  ;;  %v29_v15 = vld [vmem:[%s1578_s0 + $0x48] sm:$0xff]  ;;  %v30_v16 = vld [vmem:[%s1578_s0 + $0x50] sm:$0xff] }
   0x6   :  { %1058 = vmatprep.subr.bf16.mxu0 %v1057_v6  ;;  %v31_v17 = vld [vmem:[%s1578_s0 + $0x58] sm:$0xff]  ;;  %v32_v18 = vld [vmem:[%s1578_s0 + $0x60] sm:$0xff]  ;;  %v33_v19 = vld [vmem:[%s1578_s0 + $0x68] sm:$0xff] }
   0x7   :  { %v34_v20 = vld [vmem:[%s1578_s0 + $0x70] sm:$0xff]  ;;  %v35_v21 = vld [vmem:[%s1578_s0 + $0x78] sm:$0xff]  ;;  %v36_v22 = vld [vmem:[%s1578_s0 + $0x80] sm:$0xff] }
   0x8   :  { %v37_v23 = vld [vmem:[%s1578_s0 + $0x88] sm:$0xff]  ;;  %v38_v24 = vld [vmem:[%s1578_s0 + $0x90] sm:$0xff]  ;;  %v39_v25 = vld [vmem:[%s1578_s0 + $0x98] sm:$0xff] }
   0x9   :  { %1060 = vmatpush3.bf16.msra.mxu0 %v1057_v6  ;;  %v40_v26 = vld [vmem:[%s1578_s0 + $0xa0] sm:$0xff]  ;;  %v41_v27 = vld [vmem:[%s1578_s0 + $0xa8] sm:$0xff]  ;;  %v42_v28 = vld [vmem:[%s1578_s0 + $0xb0] sm:$0xff] }
   0xa   :  { %v43_v29 = vld [vmem:[%s1578_s0 + $0xb8] sm:$0xff]  ;;  %v44_v30 = vld [vmem:[%s1578_s0 + $0xc0] sm:$0xff]  ;;  %v45_v31 = vld [vmem:[%s1578_s0 + $0xc8] sm:$0xff] }
   0xb   :  { %v46_v32 = vld [vmem:[%s1578_s0 + $0xd0] sm:$0xff]  ;;  %v47_v33 = vld [vmem:[%s1578_s0 + $0xd8] sm:$0xff]  ;;  %v48_v34 = vld [vmem:[%s1578_s0 + $0xe0] sm:$0xff] }
   0xc   :  { %942 = vmatmul.mubr.msk.f32.vlgmr.msra.gmra.mrb[0].mxu0 %vm63_vm0, %v21_v7  ;;  %v49_v35 = vld [vmem:[%s1578_s0 + $0xe8] sm:$0xff]  ;;  %v50_v36 = vld [vmem:[%s1578_s0 + $0xf0] sm:$0xff]  ;;  %v51_v37 = vld [vmem:[%s1578_s0 + $0xf8] sm:$0xff] }
   0xd   :  { %944 = vmatprep.mubr.msk.f32.mxu0 %vm63_vm0, %v22_v8  ;;  %v417_v38 = vld [vmem:[%s1579_s3] sm:$0xff]  ;;  %v418_v39 = vld [vmem:[%s1579_s3 + $0x8] sm:$0xff]  ;;  %v419_v41 = vld [vmem:[%s1579_s3 + $0x10] sm:$0xff] }
   0xe   :  { %v1061_v40 = vpack.c.bf16 %v418_v39, %v417_v38  ;;  %v420_v42 = vld [vmem:[%s1579_s3 + $0x18] sm:$0xff]  ;;  %v421_v44 = vld [vmem:[%s1579_s3 + $0x20] sm:$0xff]  ;;  %v422_v45 = vld [vmem:[%s1579_s3 + $0x28] sm:$0xff] }
   0xf   :  { %v1065_v43 = vpack.c.bf16 %v420_v42, %v419_v41  ;;  %v1069_v46 = vpack.c.bf16 %v422_v45, %v421_v44  ;;  %v423_v47 = vld [vmem:[%s1579_s3 + $0x30] sm:$0xff]  ;;  %v424_v48 = vld [vmem:[%s1579_s3 + $0x38] sm:$0xff]  ;;  %v1346_v50 = vld [vmem:[%s1580_s2] ss:$0 sm:$0xff] }
  0x10   :  { %945 = vmatmul.mubr.msk.f32.gmra.mrb[2].mxu0 %vm63_vm0, %v23_v9  ;;  %1062 = vmatprep.subr.bf16.mxu0 %v1061_v40  ;;  %v1073_v49 = vpack.c.bf16 %v424_v48, %v423_v47 }
  0x11   :  { %947 = vmatprep.mubr.msk.f32.mxu0 %vm63_vm0, %v24_v10  ;;  %1077 = vmatprep.subr.bf16.mxu1 %v1061_v40 }
  0x12   :  { %1064 = vmatpush3.bf16.msra.mxu0 %v1061_v40  ;;  %1081 = vmatpush3.bf16.msra.mxu1 %v1061_v40 }
  0x13   :  { %1066 = vmatprep.subr.bf16.mxu0 %v1065_v43  ;;  %1078 = vmatprep.subr.bf16.mxu1 %v1065_v43 }
  0x14   :  { %948 = vmatmul.mubr.msk.f32.gmra.mrb[4].mxu0 %vm63_vm0, %v25_v11 }
  0x15   :  { %950 = vmatprep.mubr.msk.f32.mxu0 %vm63_vm0, %v26_v12 }
  0x16   :  { %1068 = vmatpush3.bf16.msra.mxu0 %v1065_v43  ;;  %1082 = vmatpush3.bf16.msra.mxu1 %v1065_v43 }
  0x17   :  { %1070 = vmatprep.subr.bf16.mxu0 %v1069_v46  ;;  %1079 = vmatprep.subr.bf16.mxu1 %v1069_v46 }
  0x18   :  { %951 = vmatmul.mubr.msk.f32.gmra.mrb[6].mxu0 %vm63_vm0, %v27_v13 }
  0x19   :  { %953 = vmatprep.mubr.msk.f32.mxu0 %vm63_vm0, %v28_v14 }
  0x1a   :  { %1072 = vmatpush3.bf16.msra.mxu0 %v1069_v46  ;;  %1083 = vmatpush3.bf16.msra.mxu1 %v1069_v46 }
  0x1b   :  { %1074 = vmatprep.subr.bf16.mxu0 %v1073_v49  ;;  %1080 = vmatprep.subr.bf16.mxu1 %v1073_v49 }
  0x1c   :  { %954 = vmatmul.mubr.msk.f32.gmra.mrb[8].mxu0 %vm63_vm0, %v29_v15 }
  0x1d   :  { %956 = vmatprep.mubr.msk.f32.mxu0 %vm63_vm0, %v30_v16 }
  0x1e   :  { %1076 = vmatpush3.bf16.msra.mxu0 %v1073_v49  ;;  %1084 = vmatpush3.bf16.msra.mxu1 %v1073_v49 }
  0x20   :  { %957 = vmatmul.mubr.msk.f32.gmra.mrb[10].mxu0 %vm63_vm0, %v31_v17 }
  0x21   :  { %959 = vmatprep.mubr.msk.f32.mxu0 %vm63_vm0, %v32_v18 }
  0x24   :  { %960 = vmatmul.mubr.msk.f32.gmra.mrb[12].mxu0 %vm63_vm0, %v33_v19 }
  0x25   :  { %962 = vmatprep.mubr.msk.f32.mxu0 %vm63_vm0, %v34_v20 }
  0x28   :  { %963 = vmatmul.mubr.msk.f32.gmra.mrb[14].mxu0 %vm63_vm0, %v35_v21 }
  0x29   :  { %965 = vmatprep.mubr.msk.f32.mxu0 %vm63_vm0, %v36_v22 }
  0x2c   :  { %966 = vmatmul.mubr.msk.f32.gmra.mrb[16].mxu0 %vm63_vm0, %v37_v23 }
  0x2d   :  { %968 = vmatprep.mubr.msk.f32.mxu0 %vm63_vm0, %v38_v24 }
  0x30   :  { %969 = vmatmul.mubr.msk.f32.gmra.mrb[18].mxu0 %vm63_vm0, %v39_v25 }
  0x31   :  { %971 = vmatprep.mubr.msk.f32.mxu0 %vm63_vm0, %v40_v26 }
  0x34   :  { %972 = vmatmul.mubr.msk.f32.gmra.mrb[20].mxu0 %vm63_vm0, %v41_v27 }
  0x35   :  { %974 = vmatprep.mubr.msk.f32.mxu0 %vm63_vm0, %v42_v28 }
  0x38   :  { %975 = vmatmul.mubr.msk.f32.gmra.mrb[22].mxu0 %vm63_vm0, %v43_v29 }
  0x39   :  { %977 = vmatprep.mubr.msk.f32.mxu0 %vm63_vm0, %v44_v30 }
  0x3c   :  { %978 = vmatmul.mubr.msk.f32.gmra.mrb[24].mxu0 %vm63_vm0, %v45_v31 }
  0x3d   :  { %980 = vmatprep.mubr.msk.f32.mxu0 %vm63_vm0, %v46_v32 }
  0x40   :  { %981 = vmatmul.mubr.msk.f32.gmra.mrb[26].mxu0 %vm63_vm0, %v47_v33 }
  0x41   :  { %983 = vmatprep.mubr.msk.f32.mxu0 %vm63_vm0, %v48_v34 }
  0x44   :  { %984 = vmatmul.mubr.msk.f32.gmra.mrb[28].mxu0 %vm63_vm0, %v49_v35 }
  0x45   :  { %986 = vmatprep.mubr.msk.f32.mxu0 %vm63_vm0, %v50_v36 }
  0x48   :  { %987 = vmatmul.mubr.msk.f32.gmra.mrb[30].mxu0 %vm63_vm0, %v51_v37 }
  0xdf   :  { %v943_v51 = vpop.f32.mrb[0].mxu0 }
  0xe0   :  { %v232_v52 = vadd.f32 %v943_v51, %v1346_v50  ;;  %v226_v53 = vpop.f32.mrb[1].mxu0 }
  0xe1   :  { %v227_v54 = vadd.f32 %v1346_v50, %v226_v53 }
  0xe3   :  { %1085 = vtanh.f32 %v227_v54  ;;  %v946_v55 = vpop.f32.mrb[2].mxu0 }
  0xe4   :  { %1087 = vtanh.f32 %v232_v52  ;;  %v242_v56 = vadd.f32 %v946_v55, %v1346_v50  ;;  %v236_v57 = vpop.f32.mrb[3].mxu0 }
  0xe5   :  { %v237_v58 = vadd.f32 %v1346_v50, %v236_v57 }
  0xe7   :  { %1089 = vtanh.f32 %v237_v58  ;;  %v949_v59 = vpop.f32.mrb[4].mxu0 }
  0xe8   :  { %1091 = vtanh.f32 %v242_v56  ;;  %v252_v60 = vadd.f32 %v949_v59, %v1346_v50  ;;  %v246_v61 = vpop.f32.mrb[5].mxu0 }
  0xe9   :  { %v247_v62 = vadd.f32 %v1346_v50, %v246_v61 }
  0xeb   :  { %1093 = vtanh.f32 %v247_v62  ;;  %v952_v63 = vpop.f32.mrb[6].mxu0 }
  0xec   :  { %1095 = vtanh.f32 %v252_v60  ;;  %v262_v0 = vadd.f32 %v952_v63, %v1346_v50  ;;  %v256_v1 = vpop.f32.mrb[7].mxu0 }
  0xed   :  { %v1086_v2 = vpop.eup %1085  ;;  %v257_v3 = vadd.f32 %v1346_v50, %v256_v1 }
  0xee   :  { %v1088_v4 = vpop.eup %1087  ;;  %1005 = vmatprep.mubr.msk.f32.mxu0 %vm432_vm1, %v1086_v2 }
  0xef   :  { %1097 = vtanh.f32 %v257_v3  ;;  %v955_v5 = vpop.f32.mrb[8].mxu0  ;;  %1006 = vmatmul.mubr.msk.f32.vlgmr.msra.gmra.mrb[32].mxu0 %vm432_vm1, %v1088_v4 }
  0xf0   :  { %1099 = vtanh.f32 %v262_v0  ;;  %v272_v6 = vadd.f32 %v955_v5, %v1346_v50  ;;  %v266_v7 = vpop.f32.mrb[9].mxu0 }
  0xf1   :  { %v1090_v8 = vpop.eup %1089  ;;  %v267_v9 = vadd.f32 %v1346_v50, %v266_v7 }
  0xf2   :  { %v1092_v10 = vpop.eup %1091  ;;  %1008 = vmatprep.mubr.msk.f32.mxu1 %vm432_vm1, %v1090_v8 }
  0xf3   :  { %1101 = vtanh.f32 %v267_v9  ;;  %v958_v11 = vpop.f32.mrb[10].mxu0  ;;  %1009 = vmatmul.mubr.msk.f32.vlgmr.msra.gmra.mrb[0].mxu1 %vm432_vm1, %v1092_v10 }
  0xf4   :  { %1103 = vtanh.f32 %v272_v6  ;;  %v282_v12 = vadd.f32 %v958_v11, %v1346_v50  ;;  %v276_v13 = vpop.f32.mrb[11].mxu0 }
  0xf5   :  { %v1094_v14 = vpop.eup %1093  ;;  %v277_v15 = vadd.f32 %v1346_v50, %v276_v13 }
  0xf6   :  { %v1096_v16 = vpop.eup %1095  ;;  %1011 = vmatprep.mubr.msk.f32.mxu1 %vm432_vm1, %v1094_v14 }
  0xf7   :  { %1105 = vtanh.f32 %v277_v15  ;;  %v961_v17 = vpop.f32.mrb[12].mxu0  ;;  %1012 = vmatmul.mubr.msk.f32.gmra.mrb[2].mxu1 %vm432_vm1, %v1096_v16 }
  0xf8   :  { %1107 = vtanh.f32 %v282_v12  ;;  %v292_v18 = vadd.f32 %v961_v17, %v1346_v50  ;;  %v286_v19 = vpop.f32.mrb[13].mxu0 }
  0xf9   :  { %v1098_v20 = vpop.eup %1097  ;;  %v287_v21 = vadd.f32 %v1346_v50, %v286_v19  ;;  %v1415_v19 = vld [vmem:[%s1581_s4] ss:$0 sm:$0xff] }
  0xfa   :  { %v1100_v22 = vpop.eup %1099  ;;  %1014 = vmatprep.mubr.msk.f32.mxu1 %vm432_vm1, %v1098_v20 }
  0xfb   :  { %1109 = vtanh.f32 %v287_v21  ;;  %v964_v23 = vpop.f32.mrb[14].mxu0  ;;  %1015 = vmatmul.mubr.msk.f32.gmra.mrb[4].mxu1 %vm432_vm1, %v1100_v22 }
  0xfc   :  { %1111 = vtanh.f32 %v292_v18  ;;  %v302_v24 = vadd.f32 %v964_v23, %v1346_v50  ;;  %v296_v25 = vpop.f32.mrb[15].mxu0 }
  0xfd   :  { %v1102_v26 = vpop.eup %1101  ;;  %v297_v27 = vadd.f32 %v1346_v50, %v296_v25 }
  0xfe   :  { %v1104_v28 = vpop.eup %1103  ;;  %1017 = vmatprep.mubr.msk.f32.mxu1 %vm432_vm1, %v1102_v26 }
  0xff   :  { %1113 = vtanh.f32 %v297_v27  ;;  %v967_v29 = vpop.f32.mrb[16].mxu0  ;;  %1018 = vmatmul.mubr.msk.f32.gmra.mrb[6].mxu1 %vm432_vm1, %v1104_v28 }
 0x100   :  { %1115 = vtanh.f32 %v302_v24  ;;  %v312_v30 = vadd.f32 %v967_v29, %v1346_v50  ;;  %v306_v31 = vpop.f32.mrb[17].mxu0 }
 0x101   :  { %v1106_v32 = vpop.eup %1105  ;;  %v307_v33 = vadd.f32 %v1346_v50, %v306_v31 }
 0x102   :  { %v1108_v34 = vpop.eup %1107  ;;  %1020 = vmatprep.mubr.msk.f32.mxu1 %vm432_vm1, %v1106_v32 }
 0x103   :  { %1117 = vtanh.f32 %v307_v33  ;;  %v970_v35 = vpop.f32.mrb[18].mxu0  ;;  %1021 = vmatmul.mubr.msk.f32.gmra.mrb[8].mxu1 %vm432_vm1, %v1108_v34 }
 0x104   :  { %1119 = vtanh.f32 %v312_v30  ;;  %v322_v36 = vadd.f32 %v970_v35, %v1346_v50  ;;  %v316_v37 = vpop.f32.mrb[19].mxu0 }
 0x105   :  { %v1110_v38 = vpop.eup %1109  ;;  %v317_v39 = vadd.f32 %v1346_v50, %v316_v37 }
 0x106   :  { %v1112_v40 = vpop.eup %1111  ;;  %1023 = vmatprep.mubr.msk.f32.mxu1 %vm432_vm1, %v1110_v38 }
 0x107   :  { %1121 = vtanh.f32 %v317_v39  ;;  %v973_v41 = vpop.f32.mrb[20].mxu0  ;;  %1024 = vmatmul.mubr.msk.f32.gmra.mrb[10].mxu1 %vm432_vm1, %v1112_v40 }
 0x108   :  { %1123 = vtanh.f32 %v322_v36  ;;  %v332_v42 = vadd.f32 %v973_v41, %v1346_v50  ;;  %v326_v43 = vpop.f32.mrb[21].mxu0 }
 0x109   :  { %v1114_v44 = vpop.eup %1113  ;;  %v327_v45 = vadd.f32 %v1346_v50, %v326_v43 }
 0x10a   :  { %v1116_v46 = vpop.eup %1115  ;;  %1026 = vmatprep.mubr.msk.f32.mxu1 %vm432_vm1, %v1114_v44 }
 0x10b   :  { %1125 = vtanh.f32 %v327_v45  ;;  %v976_v47 = vpop.f32.mrb[22].mxu0  ;;  %1027 = vmatmul.mubr.msk.f32.gmra.mrb[12].mxu1 %vm432_vm1, %v1116_v46 }
 0x10c   :  { %1127 = vtanh.f32 %v332_v42  ;;  %v342_v48 = vadd.f32 %v976_v47, %v1346_v50  ;;  %v336_v49 = vpop.f32.mrb[23].mxu0 }
 0x10d   :  { %v1118_v51 = vpop.eup %1117  ;;  %v337_v52 = vadd.f32 %v1346_v50, %v336_v49 }
 0x10e   :  { %v1120_v53 = vpop.eup %1119  ;;  %1029 = vmatprep.mubr.msk.f32.mxu1 %vm432_vm1, %v1118_v51 }
 0x10f   :  { %1129 = vtanh.f32 %v337_v52  ;;  %v979_v54 = vpop.f32.mrb[24].mxu0  ;;  %1030 = vmatmul.mubr.msk.f32.gmra.mrb[14].mxu1 %vm432_vm1, %v1120_v53 }
 0x110   :  { %1131 = vtanh.f32 %v342_v48  ;;  %v352_v55 = vadd.f32 %v979_v54, %v1346_v50  ;;  %v346_v56 = vpop.f32.mrb[25].mxu0 }
 0x111   :  { %v1122_v57 = vpop.eup %1121  ;;  %v347_v58 = vadd.f32 %v1346_v50, %v346_v56 }
 0x112   :  { %v1124_v59 = vpop.eup %1123  ;;  %1032 = vmatprep.mubr.msk.f32.mxu1 %vm432_vm1, %v1122_v57 }
 0x113   :  { %1133 = vtanh.f32 %v347_v58  ;;  %v982_v60 = vpop.f32.mrb[26].mxu0  ;;  %1033 = vmatmul.mubr.msk.f32.gmra.mrb[16].mxu1 %vm432_vm1, %v1124_v59 }
 0x114   :  { %1135 = vtanh.f32 %v352_v55  ;;  %v362_v61 = vadd.f32 %v982_v60, %v1346_v50  ;;  %v356_v62 = vpop.f32.mrb[27].mxu0 }
 0x115   :  { %v1126_v63 = vpop.eup %1125  ;;  %v357_v0 = vadd.f32 %v1346_v50, %v356_v62 }
 0x116   :  { %v1128_v1 = vpop.eup %1127  ;;  %1035 = vmatprep.mubr.msk.f32.mxu1 %vm432_vm1, %v1126_v63 }
 0x117   :  { %1137 = vtanh.f32 %v357_v0  ;;  %v985_v2 = vpop.f32.mrb[28].mxu0  ;;  %1036 = vmatmul.mubr.msk.f32.gmra.mrb[18].mxu1 %vm432_vm1, %v1128_v1 }
 0x118   :  { %1139 = vtanh.f32 %v362_v61  ;;  %v372_v3 = vadd.f32 %v985_v2, %v1346_v50  ;;  %v366_v4 = vpop.f32.mrb[29].mxu0 }
 0x119   :  { %v1130_v5 = vpop.eup %1129  ;;  %v367_v6 = vadd.f32 %v1346_v50, %v366_v4 }
 0x11a   :  { %v1132_v7 = vpop.eup %1131  ;;  %1038 = vmatprep.mubr.msk.f32.mxu1 %vm432_vm1, %v1130_v5 }
 0x11b   :  { %1141 = vtanh.f32 %v367_v6  ;;  %v988_v8 = vpop.f32.mrb[30].mxu0  ;;  %1039 = vmatmul.mubr.msk.f32.gmra.mrb[20].mxu1 %vm432_vm1, %v1132_v7 }
 0x11c   :  { %1143 = vtanh.f32 %v372_v3  ;;  %v382_v9 = vadd.f32 %v988_v8, %v1346_v50  ;;  %v376_v10 = vpop.f32.mrb[31].mxu0 }
 0x11d   :  { %v1134_v11 = vpop.eup %1133  ;;  %v377_v12 = vadd.f32 %v1346_v50, %v376_v10 }
 0x11e   :  { %v1136_v13 = vpop.eup %1135  ;;  %1041 = vmatprep.mubr.msk.f32.mxu1 %vm432_vm1, %v1134_v11 }
 0x11f   :  { %1145 = vtanh.f32 %v377_v12  ;;  %1042 = vmatmul.mubr.msk.f32.gmra.mrb[22].mxu1 %vm432_vm1, %v1136_v13 }
 0x120   :  { %1147 = vtanh.f32 %v382_v9 }
 0x121   :  { %v1138_v14 = vpop.eup %1137 }
 0x122   :  { %v1140_v15 = vpop.eup %1139  ;;  %1044 = vmatprep.mubr.msk.f32.mxu1 %vm432_vm1, %v1138_v14 }
 0x123   :  { %1045 = vmatmul.mubr.msk.f32.gmra.mrb[24].mxu1 %vm432_vm1, %v1140_v15 }
 0x125   :  { %v1142_v16 = vpop.eup %1141 }
 0x126   :  { %v1144_v17 = vpop.eup %1143  ;;  %1047 = vmatprep.mubr.msk.f32.mxu1 %vm432_vm1, %v1142_v16 }
 0x127   :  { %1048 = vmatmul.mubr.msk.f32.gmra.mrb[26].mxu1 %vm432_vm1, %v1144_v17 }
 0x129   :  { %v1146_v50 = vpop.eup %1145 }
 0x12a   :  { %v1148_v18 = vpop.eup %1147  ;;  %1050 = vmatprep.mubr.msk.f32.mxu1 %vm432_vm1, %v1146_v50 }
 0x12b   :  { %1051 = vmatmul.mubr.msk.f32.gmra.mrb[28].mxu1 %vm432_vm1, %v1148_v18 }
 0x1c2   :  { %v1007_v20 = vpop.f32.mrb[32].mxu0 }
 0x1c3   :  { %v601_v21 = vadd.f32 %v1007_v20, %v1415_v19  ;;  %v595_v22 = vpop.f32.mrb[33].mxu0 }
 0x1c4   :  { %v596_v23 = vadd.f32 %v1415_v19, %v595_v22 }
 0x1c5   :  { %756 = vst.msk [vmem:[%s1582_s5 + $0x8] sm:$0xff] %vm754_vm2, %v601_v21 }
 0x1c6   :  { %755 = vst.msk [vmem:[%s1582_s5] sm:$0xff] %vm754_vm2, %v596_v23  ;;  %v1010_v24 = vpop.f32.mrb[0].mxu1 }
 0x1c7   :  { %v611_v25 = vadd.f32 %v1010_v24, %v1415_v19  ;;  %v605_v26 = vpop.f32.mrb[1].mxu1 }
 0x1c8   :  { %v606_v27 = vadd.f32 %v1415_v19, %v605_v26 }
 0x1c9   :  { %758 = vst.msk [vmem:[%s1582_s5 + $0x18] sm:$0xff] %vm754_vm2, %v611_v25 }
 0x1ca   :  { %757 = vst.msk [vmem:[%s1582_s5 + $0x10] sm:$0xff] %vm754_vm2, %v606_v27  ;;  %v1013_v28 = vpop.f32.mrb[2].mxu1 }
 0x1cb   :  { %v621_v29 = vadd.f32 %v1013_v28, %v1415_v19  ;;  %v615_v30 = vpop.f32.mrb[3].mxu1 }
 0x1cc   :  { %v616_v31 = vadd.f32 %v1415_v19, %v615_v30 }
 0x1cd   :  { %760 = vst.msk [vmem:[%s1582_s5 + $0x28] sm:$0xff] %vm754_vm2, %v621_v29 }
 0x1ce   :  { %759 = vst.msk [vmem:[%s1582_s5 + $0x20] sm:$0xff] %vm754_vm2, %v616_v31  ;;  %v1016_v32 = vpop.f32.mrb[4].mxu1 }
 0x1cf   :  { %v631_v33 = vadd.f32 %v1016_v32, %v1415_v19  ;;  %v625_v34 = vpop.f32.mrb[5].mxu1 }
 0x1d0   :  { %v626_v35 = vadd.f32 %v1415_v19, %v625_v34 }
 0x1d1   :  { %762 = vst.msk [vmem:[%s1582_s5 + $0x38] sm:$0xff] %vm754_vm2, %v631_v33 }
 0x1d2   :  { %761 = vst.msk [vmem:[%s1582_s5 + $0x30] sm:$0xff] %vm754_vm2, %v626_v35  ;;  %v1019_v36 = vpop.f32.mrb[6].mxu1 }
 0x1d3   :  { %v641_v37 = vadd.f32 %v1019_v36, %v1415_v19  ;;  %v635_v38 = vpop.f32.mrb[7].mxu1 }
 0x1d4   :  { %v636_v39 = vadd.f32 %v1415_v19, %v635_v38 }
 0x1d5   :  { %764 = vst.msk [vmem:[%s1582_s5 + $0x48] sm:$0xff] %vm754_vm2, %v641_v37 }
 0x1d6   :  { %763 = vst.msk [vmem:[%s1582_s5 + $0x40] sm:$0xff] %vm754_vm2, %v636_v39  ;;  %v1022_v40 = vpop.f32.mrb[8].mxu1 }
 0x1d7   :  { %v651_v41 = vadd.f32 %v1022_v40, %v1415_v19  ;;  %v645_v42 = vpop.f32.mrb[9].mxu1 }
 0x1d8   :  { %v646_v43 = vadd.f32 %v1415_v19, %v645_v42 }
 0x1d9   :  { %766 = vst.msk [vmem:[%s1582_s5 + $0x58] sm:$0xff] %vm754_vm2, %v651_v41 }
 0x1da   :  { %765 = vst.msk [vmem:[%s1582_s5 + $0x50] sm:$0xff] %vm754_vm2, %v646_v43  ;;  %v1025_v44 = vpop.f32.mrb[10].mxu1 }
 0x1db   :  { %v661_v45 = vadd.f32 %v1025_v44, %v1415_v19  ;;  %v655_v46 = vpop.f32.mrb[11].mxu1 }
 0x1dc   :  { %v656_v47 = vadd.f32 %v1415_v19, %v655_v46 }
 0x1dd   :  { %768 = vst.msk [vmem:[%s1582_s5 + $0x68] sm:$0xff] %vm754_vm2, %v661_v45 }
 0x1de   :  { %767 = vst.msk [vmem:[%s1582_s5 + $0x60] sm:$0xff] %vm754_vm2, %v656_v47  ;;  %v1028_v48 = vpop.f32.mrb[12].mxu1 }
 0x1df   :  { %v671_v49 = vadd.f32 %v1028_v48, %v1415_v19  ;;  %v665_v51 = vpop.f32.mrb[13].mxu1 }
 0x1e0   :  { %v666_v52 = vadd.f32 %v1415_v19, %v665_v51 }
 0x1e1   :  { %770 = vst.msk [vmem:[%s1582_s5 + $0x78] sm:$0xff] %vm754_vm2, %v671_v49 }
 0x1e2   :  { %769 = vst.msk [vmem:[%s1582_s5 + $0x70] sm:$0xff] %vm754_vm2, %v666_v52  ;;  %v1031_v53 = vpop.f32.mrb[14].mxu1 }
 0x1e3   :  { %v681_v54 = vadd.f32 %v1031_v53, %v1415_v19  ;;  %v675_v55 = vpop.f32.mrb[15].mxu1 }
 0x1e4   :  { %v676_v56 = vadd.f32 %v1415_v19, %v675_v55 }
 0x1e5   :  { %772 = vst.msk [vmem:[%s1582_s5 + $0x88] sm:$0xff] %vm754_vm2, %v681_v54 }
 0x1e6   :  { %771 = vst.msk [vmem:[%s1582_s5 + $0x80] sm:$0xff] %vm754_vm2, %v676_v56  ;;  %v1034_v57 = vpop.f32.mrb[16].mxu1 }
 0x1e7   :  { %v691_v58 = vadd.f32 %v1034_v57, %v1415_v19  ;;  %v685_v59 = vpop.f32.mrb[17].mxu1 }
 0x1e8   :  { %v686_v60 = vadd.f32 %v1415_v19, %v685_v59 }
 0x1e9   :  { %774 = vst.msk [vmem:[%s1582_s5 + $0x98] sm:$0xff] %vm754_vm2, %v691_v58 }
 0x1ea   :  { %773 = vst.msk [vmem:[%s1582_s5 + $0x90] sm:$0xff] %vm754_vm2, %v686_v60  ;;  %v1037_v61 = vpop.f32.mrb[18].mxu1 }
 0x1eb   :  { %v701_v62 = vadd.f32 %v1037_v61, %v1415_v19  ;;  %v695_v63 = vpop.f32.mrb[19].mxu1 }
 0x1ec   :  { %v696_v0 = vadd.f32 %v1415_v19, %v695_v63 }
 0x1ed   :  { %776 = vst.msk [vmem:[%s1582_s5 + $0xa8] sm:$0xff] %vm754_vm2, %v701_v62 }
 0x1ee   :  { %775 = vst.msk [vmem:[%s1582_s5 + $0xa0] sm:$0xff] %vm754_vm2, %v696_v0  ;;  %v1040_v1 = vpop.f32.mrb[20].mxu1 }
 0x1ef   :  { %v711_v2 = vadd.f32 %v1040_v1, %v1415_v19  ;;  %v705_v3 = vpop.f32.mrb[21].mxu1 }
 0x1f0   :  { %v706_v4 = vadd.f32 %v1415_v19, %v705_v3 }
 0x1f1   :  { %778 = vst.msk [vmem:[%s1582_s5 + $0xb8] sm:$0xff] %vm754_vm2, %v711_v2 }
 0x1f2   :  { %777 = vst.msk [vmem:[%s1582_s5 + $0xb0] sm:$0xff] %vm754_vm2, %v706_v4  ;;  %v1043_v5 = vpop.f32.mrb[22].mxu1 }
 0x1f3   :  { %v721_v6 = vadd.f32 %v1043_v5, %v1415_v19  ;;  %v715_v7 = vpop.f32.mrb[23].mxu1 }
 0x1f4   :  { %v716_v8 = vadd.f32 %v1415_v19, %v715_v7 }
 0x1f5   :  { %780 = vst.msk [vmem:[%s1582_s5 + $0xc8] sm:$0xff] %vm754_vm2, %v721_v6 }
 0x1f6   :  { %779 = vst.msk [vmem:[%s1582_s5 + $0xc0] sm:$0xff] %vm754_vm2, %v716_v8  ;;  %v1046_v9 = vpop.f32.mrb[24].mxu1 }
 0x1f7   :  { %v731_v10 = vadd.f32 %v1046_v9, %v1415_v19  ;;  %v725_v11 = vpop.f32.mrb[25].mxu1 }
 0x1f8   :  { %v726_v12 = vadd.f32 %v1415_v19, %v725_v11 }
 0x1f9   :  { %782 = vst.msk [vmem:[%s1582_s5 + $0xd8] sm:$0xff] %vm754_vm2, %v731_v10 }
 0x1fa   :  { %781 = vst.msk [vmem:[%s1582_s5 + $0xd0] sm:$0xff] %vm754_vm2, %v726_v12  ;;  %v1049_v13 = vpop.f32.mrb[26].mxu1 }
 0x1fb   :  { %v741_v14 = vadd.f32 %v1049_v13, %v1415_v19  ;;  %v735_v15 = vpop.f32.mrb[27].mxu1 }
 0x1fc   :  { %v736_v16 = vadd.f32 %v1415_v19, %v735_v15 }
 0x1fd   :  { %784 = vst.msk [vmem:[%s1582_s5 + $0xe8] sm:$0xff] %vm754_vm2, %v741_v14 }
 0x1fe   :  { %783 = vst.msk [vmem:[%s1582_s5 + $0xe0] sm:$0xff] %vm754_vm2, %v736_v16  ;;  %v1052_v17 = vpop.f32.mrb[28].mxu1 }
 0x1ff   :  { %v751_v50 = vadd.f32 %v1052_v17, %v1415_v19  ;;  %v745_v18 = vpop.f32.mrb[29].mxu1 }
 0x200   :  { %v746_v20 = vadd.f32 %v1415_v19, %v745_v18 }
 0x201   :  { %786 = vst.msk [vmem:[%s1582_s5 + $0xf8] sm:$0xff] %vm754_vm2, %v751_v50 }
 0x202   :  { %785 = vst.msk [vmem:[%s1582_s5 + $0xf0] sm:$0xff] %vm754_vm2, %v746_v20 }

</bundles_post_ra>
